<compile_context>
chip_gen: v6e
topology: v6e:2x2x1
jax: 0.10.0
libtpu: 0.0.40
codegen_flags: <defaults>
</compile_context>

<pallas_src>
import math

import jax
import jax.numpy as jnp
import numpy as np
from jax.experimental import pallas as pl
from jax.experimental.pallas import tpu as pltpu


def _round_up(v, m):
    return -(-v // m) * m


def _ssd_decode_kernel(x_ref, sc_ref, bi_ref, sel_ref, o_ref):
    """Decode one tile.

    x_ref / o_ref : (nb, rows, W)  -- nb batch slices of a (rows, W) lane tile.
    sc_ref/bi_ref : (1, rows, W) or (1, 1, W) -- per-lane anchor scale / bias.
    sel_ref       : (1, 1, W) int32 lane-kind selector
                    (0 = class lane, 1 = x1/y1 lane, 2 = x2/y2 lane).

    Lane layout: each group of C = n_class + 4 consecutive lanes holds one
    anchor's channels [cls_0..cls_{n-1}, dx, dy, dw, dh]; W is a multiple of
    both C and 128, so anchor groups never straddle a row / block boundary.
    """
    sc = sc_ref[0]                       # (rows|1, W) f32
    bi = bi_ref[0]
    sel = sel_ref[0]                     # (1, W) int32
    m1 = sel == 1                        # x1 / y1 lanes
    m2 = sel == 2                        # x2 / y2 lanes
    w = sc.shape[-1]
    for i in range(x_ref.shape[0]):      # static unroll over the batch group
        x = x_ref[i].astype(jnp.float32)
        # Box centers (valid on dx/dy lanes): d * (a*0.1) + a_center.
        cen = x * sc + bi
        # Half extents (valid on dw/dh lanes): exp(d*0.2) * (a*0.5).
        ext = jnp.exp(x * 0.2) * sc
        # x1/y1 need the half extent from 2 lanes to the right; x2/y2 need the
        # center from 2 lanes to the left.  XLU rotates (free slot); wrapped
        # lanes only land on lanes that never select the shifted value
        # (guaranteed because n_class >= 2 and W % C == 0).
        ext_r = pltpu.roll(ext, w - 2, 1)     # ext[p + 2]
        cen_l = pltpu.roll(cen, 2, 1)         # cen[p - 2]
        out = jnp.where(m1, cen - ext_r, jnp.where(m2, cen_l + ext, x))
        o_ref[i] = out.astype(o_ref.dtype)


def make_ssd_postprocess(anchor, n_class, *, tile_bytes=1 << 20):
    """Build a jitted `x -> decoded` fn for a fixed anchor set (model-load time).

    anchor : [A, 4] = (cx, cy, w, h), numpy or jax array (the module's static
             self.anchor buffer).  n_class includes background.
    Returns a function mapping [B, A, n_class + 4] -> [B, A, n_class + 4].
    """
    anchor_np = np.asarray(anchor, dtype=np.float32)
    A = anchor_np.shape[0]
    C = n_class + 4
    # background + at least one class; also guarantees the first two lanes of
    # every anchor group are class lanes, which makes the roll wrap-around safe.
    assert n_class >= 2

    g = 128 // math.gcd(C, 128)          # anchors per 128-aligned lane row
    L = g * C                            # lane width of one dense row
    aligned = (A % g) == 0

    # Per-lane anchor scale / bias, interleaved exactly like x:
    #   sc = [0]*n_class, a_w*0.1, a_h*0.1, a_w*0.5, a_h*0.5
    #   bi = [0]*n_class, a_x,     a_y,     0,       0
    sc_np = np.zeros((A, C), np.float32)
    bi_np = np.zeros((A, C), np.float32)
    sc_np[:, n_class + 0] = anchor_np[:, 2] * 0.1
    sc_np[:, n_class + 1] = anchor_np[:, 3] * 0.1
    sc_np[:, n_class + 2] = anchor_np[:, 2] * 0.5
    sc_np[:, n_class + 3] = anchor_np[:, 3] * 0.5
    bi_np[:, n_class + 0] = anchor_np[:, 0]
    bi_np[:, n_class + 1] = anchor_np[:, 1]

    if aligned:
        R = A // g
        sc_dev = jnp.asarray(sc_np.reshape(1, R, L))
        bi_dev = jnp.asarray(bi_np.reshape(1, R, L))
    else:
        # TODO(synk): in deployment, pad the static anchor set (and the
        # backbone's anchor dim) offline to a multiple of g so the fully
        # sublane-dense [B, R, L] path below is taken instead of this one.
        R = 0
        sc_dev = jnp.asarray(sc_np.reshape(1, 1, A * C))
        bi_dev = jnp.asarray(bi_np.reshape(1, 1, A * C))

    def _sel(width):
        pos = np.arange(width) % C
        s = np.zeros((1, 1, width), np.int32)
        s[..., (pos == n_class) | (pos == n_class + 1)] = 1      # x1 / y1
        s[..., (pos == n_class + 2) | (pos == n_class + 3)] = 2  # x2 / y2
        return s

    @jax.jit
    def fwd(x):
        B = x.shape[0]
        assert x.shape[1:] == (A, C)
        isz = x.dtype.itemsize

        if aligned:
            # ---- lane & sublane dense path: x viewed as [B, R, L] -----------
            per_batch = R * L * isz
            if per_batch <= tile_bytes:
                br = R
                nb = max(1, min(B, 8, tile_bytes // per_batch))
            else:
                nb = 1
                br = (tile_bytes // (L * isz)) // 8 * 8
                br = R if R <= 8 else max(8, min(br, R))
            # v7x megacore: keep >= 2 grid steps so both TensorCores get work.
            if (-(-R // br)) * (-(-B // nb)) < 2:
                if B >= 2:
                    nb = max(1, B // 2)
                elif R > 8:
                    br = max(8, (((R + 1) // 2) + 7) // 8 * 8)
            row_blocks = -(-R // br)
            batch_blocks = -(-B // nb)

            sel = jnp.asarray(_sel(L))          # numpy -> baked jit constant
            xr = x.reshape(B, R, L)             # free, contiguous reshape

            out = pl.pallas_call(
                _ssd_decode_kernel,
                out_shape=jax.ShapeDtypeStruct((B, R, L), x.dtype),
                # batch innermost: the anchor-map blocks stay resident across
                # the batch axis (only re-fetched when the row block changes).
                grid=(row_blocks, batch_blocks),
                in_specs=[
                    pl.BlockSpec((nb, br, L), lambda r, b: (b, r, 0)),
                    pl.BlockSpec((1, br, L), lambda r, b: (0, r, 0)),
                    pl.BlockSpec((1, br, L), lambda r, b: (0, r, 0)),
                    pl.BlockSpec((1, 1, L), lambda r, b: (0, 0, 0)),
                ],
                out_specs=pl.BlockSpec((nb, br, L), lambda r, b: (b, r, 0)),
                compiler_params=pltpu.CompilerParams(
                    dimension_semantics=("parallel", "parallel")),
            )(xr, sc_dev, bi_dev, sel)
            return out.reshape(B, A, C)

        # ---- flat fallback (A not a multiple of g): x viewed as [1, B, A*C].
        # Zero extra HBM copies; partial edge blocks handle the ragged tail.
        N = A * C
        w_max = _round_up(N, L)
        W = (tile_bytes // max(1, B * L * isz)) * L
        W = max(L, min(W, w_max))               # W is a multiple of L (and 128)
        nblk = -(-N // W)
        if nblk < 2 and w_max >= 2 * L:         # >= 2 steps for v7x megacore
            W = _round_up(-(-N // 2), L)
            nblk = -(-N // W)

        sel = jnp.asarray(_sel(W))
        xr = x.reshape(1, B, N)                 # free, contiguous reshape

        out = pl.pallas_call(
            _ssd_decode_kernel,
            out_shape=jax.ShapeDtypeStruct((1, B, N), x.dtype),
            grid=(nblk,),
            in_specs=[
                pl.BlockSpec((1, B, W), lambda j: (0, 0, j)),
                pl.BlockSpec((1, 1, W), lambda j: (0, 0, j)),
                pl.BlockSpec((1, 1, W), lambda j: (0, 0, j)),
                pl.BlockSpec((1, 1, W), lambda j: (0, 0, 0)),
            ],
            out_specs=pl.BlockSpec((1, B, W), lambda j: (0, 0, j)),
            compiler_params=pltpu.CompilerParams(
                dimension_semantics=("parallel",)),
        )(xr, sc_dev, bi_dev, sel)
        return out.reshape(B, A, C)

    return fwd


def ssd_postprocess_ref(x, anchor, n_class):
    """Pure-JAX reference mirroring the PyTorch postprocess."""
    class_pred = x[..., :n_class]
    d_x = x[..., n_class + 0:n_class + 1]
    d_y = x[..., n_class + 1:n_class + 2]
    d_w = x[..., n_class + 2:n_class + 3]
    d_h = x[..., n_class + 3:n_class + 4]
    a_x = anchor[None, :, 0:1]
    a_y = anchor[None, :, 1:2]
    a_w = anchor[None, :, 2:3]
    a_h = anchor[None, :, 3:4]
    cx = d_x * a_w / 10.0 + a_x
    cy = d_y * a_h / 10.0 + a_y
    w = jnp.exp(d_w / 5.0) * a_w
    h = jnp.exp(d_h / 5.0) * a_h
    x1 = cx - w / 2.0
    x2 = cx + w / 2.0
    y1 = cy - h / 2.0
    y2 = cy + h / 2.0
    loc = jnp.concatenate([x1, y1, x2, y2], axis=-1)
    return jnp.concatenate([class_pred, loc], axis=-1)


def _make_anchors_np(A):
    idx = np.arange(A, dtype=np.float32)
    a_cx = (idx % 16.0 + 0.5) / 16.0
    a_cy = (idx // 16.0 % 16.0 + 0.5) / 16.0
    a_w = 0.1 + 0.05 * (idx % 4.0)
    a_h = 0.1 + 0.04 * ((idx + 1.0) % 4.0)
    return np.stack([a_cx, a_cy, a_w, a_h], axis=-1).astype(np.float32)


def _run_case(key, B, A, n_class, dtype=jnp.float32, tile_bytes=1 << 20,
              rtol=1e-5, atol=1e-5):
    C = n_class + 4
    anchor_np = _make_anchors_np(A)
    x = jax.random.normal(key, (B, A, C), dtype=jnp.float32).astype(dtype)
    fwd = make_ssd_postprocess(anchor_np, n_class, tile_bytes=tile_bytes)
    out = jax.block_until_ready(fwd(x))
    ref = ssd_postprocess_ref(x.astype(jnp.float32), jnp.asarray(anchor_np),
                              n_class)
    np.testing.assert_allclose(np.asarray(out, dtype=np.float32),
                               np.asarray(ref), rtol=rtol, atol=atol)


if __name__ == "__main__":
    key = jax.random.PRNGKey(0)
    ks = jax.random.split(key, 6)

    # Aligned fast path (A multiple of g=16): C=8.
    _run_case(ks[0], B=2, A=2048, n_class=4)
    # SSD300 anchor count padded offline to a multiple of g (deployment fast
    # path); small tile_bytes only to exercise multi-row-block partial edges.
    _run_case(ks[1], B=2, A=8736, n_class=4, tile_bytes=64 * 1024)
    # Single-image inference: grid still gets >= 2 steps (v7x megacore).
    _run_case(ks[2], B=1, A=8736, n_class=4)
    # SSD300's raw 8732 anchors (not a multiple of g): flat fallback path --
    # still exactly one read + one write of x (no pad / slice copies).
    _run_case(ks[3], B=2, A=8732, n_class=4)
    # Channel count that does not divide 128 (n_class=3 -> C=7, L=896).
    _run_case(ks[4], B=2, A=512, n_class=3)
    # bf16 backbone output (halves HBM traffic); same kernel, looser tolerance.
    _run_case(ks[5], B=2, A=2048, n_class=4, dtype=jnp.bfloat16,
              rtol=2e-2, atol=2e-2)

    print("KERNEL_OK")
</pallas_src>

<mosaic_0001>
module attributes {stable_mosaic.version = 11 : i64} {
  func.func @_ssd_decode_kernel(%arg0: i32, %arg1: i32, %arg2: memref<1x128x128xf32, #tpu.memory_space<vmem>>, %arg3: memref<1x128x128xf32, #tpu.memory_space<vmem>>, %arg4: memref<1x128x128xf32, #tpu.memory_space<vmem>>, %arg5: memref<1x1x128xi32, #tpu.memory_space<vmem>>, %arg6: memref<1x128x128xf32, #tpu.memory_space<vmem>>) attributes {dimension_semantics = [#tpu.dimension_semantics<parallel>, #tpu.dimension_semantics<parallel>], iteration_bounds = array<i64: 1, 2>, scalar_prefetch = 0 : i64, scratch_operands = 0 : i64, tpu.core_type = #tpu.core_type<tc>, window_params = [{transform_indices = @transform_0, window_bounds = array<i64: 1, 128, 128>}, {transform_indices = @transform_1, window_bounds = array<i64: 1, 128, 128>}, {transform_indices = @transform_2, window_bounds = array<i64: 1, 128, 128>}, {pipeline_mode = #tpu.pipeline_mode<synchronous>, transform_indices = @transform_3, window_bounds = array<i64: 1, 1, 128>}, {transform_indices = @transform_4, window_bounds = array<i64: 1, 128, 128>}]} {
    %c0 = arith.constant 0 : index
    %c0_0 = arith.constant 0 : index
    %c0_1 = arith.constant 0 : index
    %0 = vector.load %arg3[%c0, %c0_0, %c0_1] : memref<1x128x128xf32, #tpu.memory_space<vmem>>, vector<1x128x128xf32>
    %1 = vector.shape_cast %0 : vector<1x128x128xf32> to vector<128x128xf32>
    %c0_2 = arith.constant 0 : index
    %c0_3 = arith.constant 0 : index
    %c0_4 = arith.constant 0 : index
    %2 = vector.load %arg4[%c0_2, %c0_3, %c0_4] : memref<1x128x128xf32, #tpu.memory_space<vmem>>, vector<1x128x128xf32>
    %3 = vector.shape_cast %2 : vector<1x128x128xf32> to vector<128x128xf32>
    %c0_5 = arith.constant 0 : index
    %c0_6 = arith.constant 0 : index
    %c0_7 = arith.constant 0 : index
    %4 = vector.load %arg5[%c0_5, %c0_6, %c0_7] : memref<1x1x128xi32, #tpu.memory_space<vmem>>, vector<1x1x128xi32>
    %5 = vector.shape_cast %4 : vector<1x1x128xi32> to vector<1x128xi32>
    %c1_i32 = arith.constant 1 : i32
    %6 = vector.broadcast %c1_i32 : i32 to vector<1x128xi32>
    %7 = arith.cmpi eq, %5, %6 : vector<1x128xi32>
    %c2_i32 = arith.constant 2 : i32
    %8 = vector.broadcast %c2_i32 : i32 to vector<1x128xi32>
    %9 = arith.cmpi eq, %5, %8 : vector<1x128xi32>
    %c0_8 = arith.constant 0 : index
    %c0_9 = arith.constant 0 : index
    %c0_10 = arith.constant 0 : index
    %10 = vector.load %arg2[%c0_8, %c0_9, %c0_10] : memref<1x128x128xf32, #tpu.memory_space<vmem>>, vector<1x128x128xf32>
    %11 = vector.shape_cast %10 : vector<1x128x128xf32> to vector<128x128xf32>
    %12 = arith.mulf %11, %1 : vector<128x128xf32>
    %13 = arith.addf %12, %3 : vector<128x128xf32>
    %cst = arith.constant 2.000000e-01 : f32
    %14 = vector.broadcast %cst : f32 to vector<128x128xf32>
    %15 = arith.mulf %11, %14 : vector<128x128xf32>
    %16 = math.exp %15 : vector<128x128xf32>
    %17 = arith.mulf %16, %1 : vector<128x128xf32>
    %c126_i32 = arith.constant 126 : i32
    %18 = tpu.dynamic_rotate %17 by %c126_i32 dim 1 : vector<128x128xf32>, i32 -> vector<128x128xf32>
    %c2_i32_11 = arith.constant 2 : i32
    %19 = tpu.dynamic_rotate %13 by %c2_i32_11 dim 1 : vector<128x128xf32>, i32 -> vector<128x128xf32>
    %20 = arith.subf %13, %18 : vector<128x128xf32>
    %21 = arith.addf %19, %17 : vector<128x128xf32>
    %22 = vector.shape_cast %9 : vector<1x128xi1> to vector<1x128xi1>
    %23 = vector.broadcast %22 : vector<1x128xi1> to vector<128x128xi1>
    %24 = arith.select %23, %21, %11 : vector<128x128xi1>, vector<128x128xf32>
    %25 = vector.shape_cast %7 : vector<1x128xi1> to vector<1x128xi1>
    %26 = vector.broadcast %25 : vector<1x128xi1> to vector<128x128xi1>
    %27 = arith.select %26, %20, %24 : vector<128x128xi1>, vector<128x128xf32>
    %c0_12 = arith.constant 0 : index
    %c0_13 = arith.constant 0 : index
    %c0_14 = arith.constant 0 : index
    %28 = vector.load %arg6[%c0_12, %c0_13, %c0_14] : memref<1x128x128xf32, #tpu.memory_space<vmem>>, vector<1x128x128xf32>
    %29 = vector.shape_cast %28 : vector<1x128x128xf32> to vector<128x128xf32>
    %30 = vector.shape_cast %27 : vector<128x128xf32> to vector<1x128x128xf32>
    tpu.vector_store %arg6[%c0_12, %c0_13, %c0_14], %30 {strides = array<i32>} : memref<1x128x128xf32, #tpu.memory_space<vmem>>, vector<1x128x128xf32>,
    return
  }
  func.func @transform_0(%arg0: i32, %arg1: i32) -> (i32, i32, i32) {
    %c0_i32 = arith.constant 0 : i32
    %c0_i32_0 = arith.constant 0 : i32
    return %arg1, %arg0, %c0_i32 : i32, i32, i32
  }
  func.func @transform_1(%arg0: i32, %arg1: i32) -> (i32, i32, i32) {
    %c0_i32 = arith.constant 0 : i32
    %c0_i32_0 = arith.constant 0 : i32
    %c0_i32_1 = arith.constant 0 : i32
    return %c0_i32, %arg0, %c0_i32_0 : i32, i32, i32
  }
  func.func @transform_2(%arg0: i32, %arg1: i32) -> (i32, i32, i32) {
    %c0_i32 = arith.constant 0 : i32
    %c0_i32_0 = arith.constant 0 : i32
    %c0_i32_1 = arith.constant 0 : i32
    return %c0_i32, %arg0, %c0_i32_0 : i32, i32, i32
  }
  func.func @transform_3(%arg0: i32, %arg1: i32) -> (i32, i32, i32) {
    %c0_i32 = arith.constant 0 : i32
    %c0_i32_0 = arith.constant 0 : i32
    %c0_i32_1 = arith.constant 0 : i32
    %c0_i32_2 = arith.constant 0 : i32
    return %c0_i32, %c0_i32_0, %c0_i32_1 : i32, i32, i32
  }
  func.func @transform_4(%arg0: i32, %arg1: i32) -> (i32, i32, i32) {
    %c0_i32 = arith.constant 0 : i32
    %c0_i32_0 = arith.constant 0 : i32
    return %arg1, %arg0, %c0_i32 : i32, i32, i32
  }
}

</mosaic_0001>

<bundles_post_ra>
// kernel: fwd.1
= control target key start
LH: loop header
LB: loop body
LE: loop exit
PB: predicated region body
PF: predicated region fallthrough
CT: control target
= control target key end

     0   :  { %s827_s15 = smov 0   ;;  %s829_s16 = smov 0   ;;  %s1400_s0 = inlined_call_operand.vmem [shape: f32[2,128,128], index: 0, kind: input, shape index: {}]   ;;  %s1401_s1 = inlined_call_operand.vmem [shape: f32[1,128,128], index: 1, kind: input, shape index: {}]   ;;  %s1402_s2 = inlined_call_operand.vmem [shape: f32[1,128,128], index: 2, kind: input, shape index: {}]   ;;  %s1403_s3 = inlined_call_operand.vmem [shape: s32[1,1,128], index: 3, kind: input, shape index: {}]   ;;  %s1404_s4 = inlined_call_operand.vmem [shape: f32[2,128,128], index: 4, kind: output, shape index: {}]  }
   0x1   :  { %s831_s17 = smov 0  }
   0x2 LB: > { %s23_s18 = sadd.s32 1, %s793_s16  ;;  %p707_p0 = scmp.ge.s32.totalorder %s797_s17, 1  ;;  %s797_s17 = sphi %s831_s17, %s14_s17   ;;  %s793_s16 = sphi %s829_s16, %s1436_s16   ;;  %s789_s15 = sphi %s827_s15, %s1435_s15  }
   0x3   : > { %p24_p1 = scmp.ge.s32.totalorder %s23_s18, 2  ;;  %p205_p2 = scmp.lt.s32.totalorder %s797_s17, 3 }
   0x5   : > { %s1438_s18 = smov (%p24_p1, %s23_s18), 0  ;;  %p206_p3 = pnand %p707_p0, %p205_p2 }
   0x7   : > { %209 = sbr.rel (%p206_p3) target bundleno = 201 (0xc9), region = 36 }
   0xc   : > { %p250_p4 = scmp.lt.s32.totalorder %s789_s15, 1  ;;  %v850_v0 = vld [vmem:[%s1401_s1 + $0x10] sm:$0xff]  ;;  %v859_v2 = vld [vmem:[%s1401_s1] sm:$0xff]  ;;  %v874_v4 = vld [vmem:[%s1401_s1 + $0x18] sm:$0xff]  ;;  %s799_s24 = smov 2  }
   0xd   : > { %v299_v1 = vld [vmem:[%s1402_s2 + $0x10] sm:$0xff]  ;;  %v297_v3 = vld [vmem:[%s1402_s2] sm:$0xff]  ;;  %v300_v5 = vld [vmem:[%s1402_s2 + $0x18] sm:$0xff]  ;;  %s800_s28 = smov 126  }
   0xe   : > { %s1440_s15 = smov (!%p250_p4, %s789_s15), 1  ;;  %v882_v6 = vld [vmem:[%s1401_s1 + $0x8] sm:$0xff]  ;;  %v918_v18 = vld [vmem:[%s1401_s1 + $0x20] sm:$0xff]  ;;  %v945_v27 = vld [vmem:[%s1401_s1 + $0x38] sm:$0xff] }
   0xf   : > { %s714_s21 = sshll.u32 %s1440_s15, 7  ;;  %v298_v12 = vld [vmem:[%s1402_s2 + $0x8] sm:$0xff]  ;;  %v301_v29 = vld [vmem:[%s1402_s2 + $0x20] sm:$0xff]  ;;  %v956_v30 = vld [vmem:[%s1401_s1 + $0x30] sm:$0xff] }
  0x10   : > { %s869_s30 = scalar_lea.vmem %s1400_s0, %s714_s21  ;;  %v906_v14 = vld [vmem:[%s1401_s1 + $0x28] sm:$0xff]  ;;  %v304_v33 = vld [vmem:[%s1402_s2 + $0x38] sm:$0xff]  ;;  %v303_v41 = vld [vmem:[%s1402_s2 + $0x30] sm:$0xff]  ;;  %s1255_s7 = scalar_lea.vmem %s1404_s4, %s714_s21 }
  0x11   : > { %v885_v7 = vld [vmem:[%s869_s30 + $0x10] sm:$0xff]  ;;  %v888_v8 = vld [vmem:[%s869_s30] sm:$0xff]  ;;  %v891_v9 = vld [vmem:[%s869_s30 + $0x18] sm:$0xff] }
  0x12   : > { %v334_v10 = vmul.f32 %v885_v7, %v850_v0  ;;  %v332_v11 = vmul.f32 %v888_v8, %v859_v2  ;;  %v901_v13 = vld [vmem:[%s869_s30 + $0x8] sm:$0xff]  ;;  %v335_v15 = vmul.f32 %v891_v9, %v874_v4  ;;  %v921_v19 = vld [vmem:[%s869_s30 + $0x20] sm:$0xff]  ;;  %v948_v28 = vld [vmem:[%s869_s30 + $0x38] sm:$0xff]  ;;  %v364_v32 = vmul.f32 0.2, %v888_v8 }
  0x13   : > { %v333_v16 = vmul.f32 %v901_v13, %v882_v6  ;;  %v913_v17 = vld [vmem:[%s869_s30 + $0x28] sm:$0xff]  ;;  %v336_v26 = vmul.f32 %v921_v19, %v918_v18  ;;  %v959_v31 = vld [vmem:[%s869_s30 + $0x30] sm:$0xff]  ;;  %v339_v34 = vmul.f32 %v948_v28, %v945_v27  ;;  %v365_v35 = vmul.f32 0.2, %v901_v13  ;;  %v992_v42 = vld [vmem:[%s1401_s1 + $0x40] sm:$0xff] }
  0x14   : > { %v923_v20 = vadd.f32 %v334_v10, %v299_v1  ;;  %v925_v21 = vadd.f32 %v332_v11, %v297_v3  ;;  %v927_v22 = vadd.f32 %v335_v15, %v300_v5  ;;  %v302_v23 = vld [vmem:[%s1402_s2 + $0x28] sm:$0xff]  ;;  %v337_v25 = vmul.f32 %v913_v17, %v906_v14  ;;  %v995_v43 = vld [vmem:[%s869_s30 + $0x40] sm:$0xff]  ;;  %v1020_v54 = vld [vmem:[%s1401_s1 + $0x58] sm:$0xff] }
  0x15   : > { %v936_v24 = vadd.f32 %v333_v16, %v298_v12  ;;  %v974_v37 = vadd.f32 %v336_v26, %v301_v29  ;;  %v338_v38 = vmul.f32 %v959_v31, %v956_v30  ;;  %v981_v39 = vld [vmem:[%s1401_s1 + $0x48] sm:$0xff]  ;;  %v366_v44 = vmul.f32 0.2, %v885_v7  ;;  %v305_v52 = vld [vmem:[%s1402_s2 + $0x40] sm:$0xff]  ;;  %v1023_v55 = vld [vmem:[%s869_s30 + $0x58] sm:$0xff] }
  0x16   : > { %464 = vrot.lane.b32.xlu1 %v923_v20, %s799_s24  ;;  %460 = vrot.lane.b32.xlu0 %v925_v21, %s799_s24  ;;  %v972_v36 = vadd.f32 %v337_v25, %v302_v23  ;;  %v984_v40 = vld [vmem:[%s869_s30 + $0x48] sm:$0xff]  ;;  %v380_v45 = vmul.f32 1.442695, %v364_v32  ;;  %v367_v46 = vmul.f32 0.2, %v891_v9  ;;  %v1008_v50 = vadd.f32 %v339_v34, %v304_v33  ;;  %v1028_v56 = vld [vmem:[%s1401_s1 + $0x50] sm:$0xff] }
  0x17   : > { %v306_v47 = vld [vmem:[%s1402_s2 + $0x48] sm:$0xff]  ;;  %v341_v48 = vmul.f32 %v984_v40, %v981_v39  ;;  %v382_v49 = vmul.f32 1.442695, %v365_v35  ;;  %v1010_v51 = vadd.f32 %v338_v38, %v303_v41  ;;  %v340_v53 = vmul.f32 %v995_v43, %v992_v42  ;;  %v1031_v57 = vld [vmem:[%s869_s30 + $0x50] sm:$0xff]  ;;  %v308_v63 = vld [vmem:[%s1402_s2 + $0x58] sm:$0xff] }
  0x18   : > { %1415 = vst [vmem:[#allocation2_spill] sm:$0xff] %v1031_v57  ;;  %v384_v58 = vmul.f32 1.442695, %v366_v44  ;;  %v369_v59 = vmul.f32 0.2, %v913_v17  ;;  %743 = vpow2.f32 %v380_v45  ;;  %v343_v3 = vmul.f32 %v1023_v55, %v1020_v54  ;;  %v1053_v10 = vld [vmem:[%s1401_s1 + $0x68] sm:$0xff] }
  0x19   : > { %v386_v60 = vmul.f32 1.442695, %v367_v46  ;;  %v368_v61 = vmul.f32 0.2, %v921_v19  ;;  %v1035_v62 = vadd.f32 %v341_v48, %v306_v47  ;;  %745 = vpow2.f32 %v382_v49  ;;  %v1056_v11 = vld [vmem:[%s869_s30 + $0x68] sm:$0xff]  ;;  %v307_v12 = vld [vmem:[%s1402_s2 + $0x50] sm:$0xff] }
  0x1a   : > { %466 = vrot.lane.b32.xlu1 %v927_v22, %s799_s24  ;;  %462 = vrot.lane.b32.xlu0 %v936_v24, %s799_s24  ;;  %v1044_v1 = vadd.f32 %v340_v53, %v305_v52  ;;  %v342_v5 = vmul.f32 %v1031_v57, %v1028_v56  ;;  %1416 = vst [vmem:[#allocation3_spill] sm:$0xff] %v1056_v11  ;;  %v1064_v15 = vld [vmem:[%s1401_s1 + $0x60] sm:$0xff]  ;;  %747 = vpow2.f32 %v384_v58  ;;  %v390_v23 = vmul.f32 1.442695, %v369_v59  ;;  %v310_v29 = vld [vmem:[%s1402_s2 + $0x68] sm:$0xff] }
  0x1b   : > { %v1067_v16 = vld [vmem:[%s869_s30 + $0x60] sm:$0xff]  ;;  %v371_v25 = vmul.f32 0.2, %v948_v28  ;;  %749 = vpow2.f32 %v386_v60  ;;  %v388_v26 = vmul.f32 1.442695, %v368_v61  ;;  %v345_v32 = vmul.f32 %v1056_v11, %v1053_v10  ;;  %v1092_v44 = vld [vmem:[%s1401_s1 + $0x78] sm:$0xff] }
  0x1c   : > { %1417 = vst [vmem:[#allocation4_spill] sm:$0xff] %v1067_v16  ;;  %v370_v33 = vmul.f32 0.2, %v959_v31  ;;  %v1080_v34 = vadd.f32 %v343_v3, %v308_v63  ;;  %v1082_v35 = vadd.f32 %v342_v5, %v307_v12  ;;  %v309_v38 = vld [vmem:[%s1402_s2 + $0x60] sm:$0xff]  ;;  %v344_v41 = vmul.f32 %v1067_v16, %v1064_v15  ;;  %v1095_v45 = vld [vmem:[%s869_s30 + $0x78] sm:$0xff]  ;;  %v1100_v46 = vld [vmem:[%s1401_s1 + $0x70] sm:$0xff] }
  0x1d   : > { %1418 = vst [vmem:[#allocation5_spill] sm:$0xff] %v1095_v45  ;;  %v1103_v47 = vld [vmem:[%s869_s30 + $0x70] sm:$0xff]  ;;  %751 = vpow2.f32 %v390_v23  ;;  %v394_v48 = vmul.f32 1.442695, %v371_v25  ;;  %v373_v49 = vmul.f32 0.2, %v984_v40  ;;  %v1107_v53 = vadd.f32 %v345_v32, %v310_v29 }
  0x1e   : > { %470 = vrot.lane.b32.xlu1 %v972_v36, %s799_s24  ;;  %468 = vrot.lane.b32.xlu0 %v974_v37, %s799_s24  ;;  %1419 = vst [vmem:[#allocation6_spill] sm:$0xff] %v1103_v47  ;;  %753 = vpow2.f32 %v388_v26  ;;  %v372_v52 = vmul.f32 0.2, %v995_v43  ;;  %v392_v58 = vmul.f32 1.442695, %v370_v33  ;;  %v1113_v59 = vadd.f32 %v344_v41, %v309_v38  ;;  %v312_v63 = vld [vmem:[%s1402_s2 + $0x78] sm:$0xff] }
  0x1f   : > { %v347_v60 = vmul.f32 %v1095_v45, %v1092_v44  ;;  %v346_v61 = vmul.f32 %v1103_v47, %v1100_v46  ;;  %v311_v3 = vld [vmem:[%s1402_s2 + $0x70] sm:$0xff]  ;;  %v375_v5 = vmul.f32 0.2, %v1023_v55  ;;  %755 = vpow2.f32 %v394_v48 }
  0x20   : > { %1420 = vst [vmem:[#allocation7_spill] sm:$0xff] %v1113_v59  ;;  %v398_v12 = vmul.f32 1.442695, %v373_v49  ;;  %v374_v23 = vmul.f32 0.2, %v1031_v57  ;;  %757 = vpow2.f32 %v392_v58 }
  0x21   : > { %v396_v26 = vmul.f32 1.442695, %v372_v52  ;;  %v1131_v29 = vadd.f32 %v347_v60, %v312_v63  ;;  %v1133_v32 = vadd.f32 %v346_v61, %v311_v3  ;;  %v402_v38 = vmul.f32 1.442695, %v375_v5 }
  0x22   : > { %474 = vrot.lane.b32.xlu1 %v1008_v50, %s799_s24  ;;  %472 = vrot.lane.b32.xlu0 %v1010_v51, %s799_s24  ;;  %759 = vpow2.f32 %v398_v12  ;;  %v400_v48 = vmul.f32 1.442695, %v374_v23  ;;  %v377_v49 = vmul.f32 0.2, %v1056_v11  ;;  %v376_v52 = vmul.f32 0.2, %v1067_v16 }
  0x23   : > { %1421 = vst [vmem:[#allocation8_spill] sm:$0xff] %v1131_v29  ;;  %1422 = vst [vmem:[#allocation9_spill] sm:$0xff] %v1133_v32  ;;  %761 = vpow2.f32 %v396_v26  ;;  %v379_v3 = vmul.f32 0.2, %v1095_v45  ;;  %v378_v23 = vmul.f32 0.2, %v1103_v47 }
  0x24   : > { %763 = vpow2.f32 %v402_v38  ;;  %v406_v63 = vmul.f32 1.442695, %v377_v49  ;;  %v404_v12 = vmul.f32 1.442695, %v376_v52 }
  0x25   : > { %v744_v25 = vpop.eup %743  ;;  %765 = vpow2.f32 %v400_v48 }
  0x26   : > { %478 = vrot.lane.b32.xlu1 %v1035_v62, %s799_s24  ;;  %476 = vrot.lane.b32.xlu0 %v1044_v1, %s799_s24  ;;  %v746_v33 = vpop.eup %745  ;;  %v1145_v60 = vmul.f32 %v744_v25, %v859_v2  ;;  %767 = vpow2.f32 %v406_v63  ;;  %v410_v25 = vmul.f32 1.442695, %v379_v3 }
  0x27   : > { %v748_v41 = vpop.eup %747  ;;  %v1142_v58 = vmul.f32 %v746_v33, %v882_v6  ;;  %769 = vpow2.f32 %v404_v12  ;;  %v408_v33 = vmul.f32 1.442695, %v378_v23 }
  0x28   : > { %v750_v57 = vpop.eup %749  ;;  %v1157_v6 = vmul.f32 %v748_v41, %v850_v0  ;;  %771 = vpow2.f32 %v410_v25 }
  0x29   : > { %v1154_v2 = vmul.f32 %v750_v57, %v874_v4  ;;  %773 = vpow2.f32 %v408_v33 }
  0x2a   : > { %482 = vrot.lane.b32.xlu1 %v1080_v34, %s799_s24  ;;  %480 = vrot.lane.b32.xlu0 %v1082_v35, %s799_s24  ;;  %v752_v61 = vpop.eup %751 }
  0x2b   : > { %v754_v5 = vpop.eup %753  ;;  %v1164_v38 = vmul.f32 %v752_v61, %v906_v14 }
  0x2c   : > { %v756_v26 = vpop.eup %755  ;;  %v1167_v4 = vmul.f32 %v754_v5, %v918_v18 }
  0x2d   : > { %v758_v57 = vpop.eup %757  ;;  %v1174_v41 = vmul.f32 %v756_v26, %v945_v27 }
  0x2e   : > { %486 = vrot.lane.b32.xlu1 %v1107_v53, %s799_s24  ;;  %484 = vrot.lane.b32.xlu0 %v1113_v59, %s799_s24  ;;  %v1177_v48 = vmul.f32 %v758_v57, %v956_v30 }
  0x2f   : > { %v760_v0 = vpop.eup %759 }
  0x30   : > { %v762_v14 = vpop.eup %761  ;;  %v1184_v52 = vmul.f32 %v760_v0, %v981_v39 }
  0x31   : > { %v764_v49 = vpop.eup %763  ;;  %v1187_v61 = vmul.f32 %v762_v14, %v992_v42  ;;  %v525_v14 = vlaneseq }
  0x32   : > { %490 = vrot.lane.b32.xlu1 %v1131_v29, %s799_s24  ;;  %488 = vrot.lane.b32.xlu0 %v1133_v32, %s799_s24  ;;  %v766_v18 = vpop.eup %765  ;;  %v1194_v30 = vmul.f32 %v764_v49, %v1020_v54 }
  0x33   : > { %v768_v27 = vpop.eup %767  ;;  %v1197_v63 = vmul.f32 %v766_v18, %v1028_v56  ;;  %v526_v18 = vshrl.u32 %v525_v14, 7 }
  0x34   : > { %v770_v3 = vpop.eup %769  ;;  %v1204_v39 = vmul.f32 %v768_v27, %v1053_v10 }
  0x35   : > { %v772_v5 = vpop.eup %771  ;;  %v1207_v42 = vmul.f32 %v770_v3, %v1064_v15 }
  0x36   : > { %430 = vrot.lane.b32.xlu1 %v1142_v58, %s800_s28  ;;  %428 = vrot.lane.b32.xlu0 %v1145_v60, %s800_s28  ;;  %v774_v12 = vpop.eup %773  ;;  %v1214_v54 = vmul.f32 %v772_v5, %v1092_v44  ;;  %v527_v5 = vsub.s32 0, %v526_v18 }
  0x37   : > { %v1217_v56 = vmul.f32 %v774_v12, %v1100_v46  ;;  %v313_v46 = vld [vmem:[%s1403_s3] sm:$0x1]  ;;  %v801_v12 = vmov 0  }
  0x38   : > { %1423 = vst [vmem:[#allocation10_spill] sm:$0xff] %v1214_v54  ;;  %vm315_vm0 = vcmp.eq.s32.totalorder %v313_v46, 2  ;;  %vm314_vm1 = vcmp.eq.s32.totalorder %v313_v46, 1 }
  0x39   : > { %1424 = vst [vmem:[#allocation11_spill] sm:$0xff] %v1217_v56  ;;  %v524_v47 = vsel %vm315_vm0, 1, %v801_v12  ;;  %v546_v29 = vsel %vm314_vm1, 1, %v801_v12 }
  0x3a   : > { %434 = vrot.lane.b32.xlu1 %v1154_v2, %s800_s28  ;;  %432 = vrot.lane.b32.xlu0 %v1157_v6, %s800_s28  ;;  %v1244_v16 = vrot.slane %v546_v29, %v527_v5 }
  0x3c   : > { %vm551_vm3 = vcmp.eq.s32.totalorder %v1244_v16, 1 }
  0x3e   : > { %438 = vrot.lane.b32.xlu1 %v1164_v38, %s800_s28  ;;  %436 = vrot.lane.b32.xlu0 %v1167_v4, %s800_s28 }
  0x42   : > { %442 = vrot.lane.b32.xlu1 %v1174_v41, %s800_s28  ;;  %440 = vrot.lane.b32.xlu0 %v1177_v48, %s800_s28 }
  0x46   : > { %446 = vrot.lane.b32.xlu1 %v1184_v52, %s800_s28  ;;  %444 = vrot.lane.b32.xlu0 %v1187_v61, %s800_s28 }
  0x4a   : > { %450 = vrot.lane.b32.xlu1 %v1194_v30, %s800_s28  ;;  %448 = vrot.lane.b32.xlu0 %v1197_v63, %s800_s28 }
  0x4e   : > { %454 = vrot.lane.b32.xlu1 %v1204_v39, %s800_s28  ;;  %452 = vrot.lane.b32.xlu0 %v1207_v42, %s800_s28 }
  0x52   : > { %458 = vrot.lane.b32.xlu1 %v1214_v54, %s800_s28  ;;  %456 = vrot.lane.b32.xlu0 %v1217_v56, %s800_s28  ;;  %v1238_v56 = vrot.slane %v524_v47, %v527_v5 }
  0x54   : > { %vm529_vm2 = vcmp.eq.s32.totalorder %v1238_v56, 1 }
  0x88   : > { %v465_v10 = vpop.permute.xlu1 %464  ;;  %v461_v15 = vpop.permute.xlu0 %460 }
  0x89   : > { %v508_v11 = vadd.f32 %v461_v15, %v1145_v60 }
  0x8b   : > { %v530_v60 = vsel %vm529_vm2, %v508_v11, %v888_v8 }
  0x8c   : > { %v467_v23 = vpop.permute.xlu1 %466  ;;  %v463_v25 = vpop.permute.xlu0 %462 }
  0x8d   : > { %v509_v46 = vadd.f32 %v463_v25, %v1142_v58  ;;  %v510_v58 = vadd.f32 %v465_v10, %v1157_v6  ;;  %v511_v15 = vadd.f32 %v467_v23, %v1154_v2 }
  0x8f   : > { %v531_v25 = vsel %vm529_vm2, %v509_v46, %v901_v13  ;;  %v532_v2 = vsel %vm529_vm2, %v510_v58, %v885_v7  ;;  %v533_v13 = vsel %vm529_vm2, %v511_v15, %v891_v9 }
  0x90   : > { %v471_v26 = vpop.permute.xlu1 %470  ;;  %v469_v33 = vpop.permute.xlu0 %468 }
  0x91   : > { %v513_v6 = vadd.f32 %v471_v26, %v1164_v38  ;;  %v512_v10 = vadd.f32 %v469_v33, %v1167_v4 }
  0x93   : > { %v535_v38 = vsel %vm529_vm2, %v513_v6, %v913_v17  ;;  %v534_v4 = vsel %vm529_vm2, %v512_v10, %v921_v19 }
  0x94   : > { %v475_v57 = vpop.permute.xlu1 %474  ;;  %v473_v0 = vpop.permute.xlu0 %472 }
  0x95   : > { %v515_v26 = vadd.f32 %v475_v57, %v1174_v41  ;;  %v514_v33 = vadd.f32 %v473_v0, %v1177_v48 }
  0x97   : > { %v537_v41 = vsel %vm529_vm2, %v515_v26, %v948_v28  ;;  %v536_v48 = vsel %vm529_vm2, %v514_v33, %v959_v31 }
  0x98   : > { %v1223_v44 = vpop.permute.xlu1 %478  ;;  %v1225_v49 = vpop.permute.xlu0 %476 }
  0x99   : > { %v517_v57 = vadd.f32 %v1223_v44, %v1184_v52  ;;  %v516_v0 = vadd.f32 %v1225_v49, %v1187_v61 }
  0x9b   : > { %v539_v52 = vsel %vm529_vm2, %v517_v57, %v984_v40  ;;  %v538_v61 = vsel %vm529_vm2, %v516_v0, %v995_v43 }
  0x9c   : > { %v1230_v27 = vpop.permute.xlu1 %482  ;;  %v1232_v3 = vpop.permute.xlu0 %480 }
  0x9d   : > { %v519_v44 = vadd.f32 %v1230_v27, %v1194_v30  ;;  %v518_v49 = vadd.f32 %v1232_v3, %v1197_v63  ;;  %v1425_v63 = vld [vmem:[#allocation2_spill] sm:$0xff] }
  0x9f   : > { %v541_v30 = vsel %vm529_vm2, %v519_v44, %v1023_v55  ;;  %v540_v27 = vsel %vm529_vm2, %v518_v49, %v1425_v63 }
  0xa0   : > { %v1234_v45 = vpop.permute.xlu1 %486  ;;  %v1236_v32 = vpop.permute.xlu0 %484 }
  0xa1   : > { %v521_v3 = vadd.f32 %v1234_v45, %v1204_v39  ;;  %v520_v15 = vadd.f32 %v1236_v32, %v1207_v42  ;;  %v1427_v45 = vld [vmem:[#allocation3_spill] sm:$0xff]  ;;  %v1428_v32 = vld [vmem:[#allocation4_spill] sm:$0xff] }
  0xa3   : > { %v543_v39 = vsel %vm529_vm2, %v521_v3, %v1427_v45  ;;  %v542_v42 = vsel %vm529_vm2, %v520_v15, %v1428_v32 }
  0xa4   : > { %v1240_v54 = vpop.permute.xlu1 %490  ;;  %v1242_v14 = vpop.permute.xlu0 %488 }
  0xa8   : > { %v431_v18 = vpop.permute.xlu1 %430  ;;  %v429_v59 = vpop.permute.xlu0 %428 }
  0xa9   : > { %v493_v47 = vsub.f32 %v936_v24, %v431_v18  ;;  %v492_v29 = vsub.f32 %v925_v21, %v429_v59 }
  0xab   : > { %v553_v5 = vsel %vm551_vm3, %v493_v47, %v531_v25  ;;  %v552_v21 = vsel %vm551_vm3, %v492_v29, %v530_v60 }
  0xac   : > { %569 = vst [vmem:[%s1255_s7 + $0x8] sm:$0xff] %v553_v5  ;;  %568 = vst [vmem:[%s1255_s7] sm:$0xff] %v552_v21  ;;  %v435_v24 = vpop.permute.xlu1 %434  ;;  %v433_v59 = vpop.permute.xlu0 %432  ;;  %v1426_v21 = vld [vmem:[#allocation7_spill] sm:$0xff] }
  0xad   : > { %v495_v8 = vsub.f32 %v927_v22, %v435_v24  ;;  %v494_v11 = vsub.f32 %v923_v20, %v433_v59  ;;  %v1429_v59 = vld [vmem:[#allocation10_spill] sm:$0xff] }
  0xaf   : > { %v555_v23 = vsel %vm551_vm3, %v495_v8, %v533_v13  ;;  %v554_v20 = vsel %vm551_vm3, %v494_v11, %v532_v2  ;;  %v523_v8 = vadd.f32 %v1240_v54, %v1429_v59  ;;  %v1430_v11 = vld [vmem:[#allocation11_spill] sm:$0xff] }
  0xb0   : > { %571 = vst [vmem:[%s1255_s7 + $0x18] sm:$0xff] %v555_v23  ;;  %570 = vst [vmem:[%s1255_s7 + $0x10] sm:$0xff] %v554_v20  ;;  %v439_v22 = vpop.permute.xlu1 %438  ;;  %v437_v7 = vpop.permute.xlu0 %436  ;;  %v522_v2 = vadd.f32 %v1242_v14, %v1430_v11  ;;  %v1431_v23 = vld [vmem:[#allocation8_spill] sm:$0xff] }
  0xb1   : > { %v497_v12 = vsub.f32 %v972_v36, %v439_v22  ;;  %v496_v9 = vsub.f32 %v974_v37, %v437_v7  ;;  %v1432_v22 = vld [vmem:[#allocation9_spill] sm:$0xff] }
  0xb3   : > { %v557_v46 = vsel %vm551_vm3, %v497_v12, %v535_v38  ;;  %v556_v36 = vsel %vm551_vm3, %v496_v9, %v534_v4  ;;  %v1433_v12 = vld [vmem:[#allocation5_spill] sm:$0xff]  ;;  %v1434_v9 = vld [vmem:[#allocation6_spill] sm:$0xff] }
  0xb4   : > { %573 = vst [vmem:[%s1255_s7 + $0x28] sm:$0xff] %v557_v46  ;;  %572 = vst [vmem:[%s1255_s7 + $0x20] sm:$0xff] %v556_v36  ;;  %v443_v37 = vpop.permute.xlu1 %442  ;;  %v441_v17 = vpop.permute.xlu0 %440  ;;  %v545_v54 = vsel %vm529_vm2, %v523_v8, %v1433_v12  ;;  %v544_v14 = vsel %vm529_vm2, %v522_v2, %v1434_v9 }
  0xb5   : > { %v499_v18 = vsub.f32 %v1008_v50, %v443_v37  ;;  %v498_v19 = vsub.f32 %v1010_v51, %v441_v17 }
  0xb7   : > { %v559_v50 = vsel %vm551_vm3, %v499_v18, %v537_v41  ;;  %v558_v51 = vsel %vm551_vm3, %v498_v19, %v536_v48 }
  0xb8   : > { %575 = vst [vmem:[%s1255_s7 + $0x38] sm:$0xff] %v559_v50  ;;  %574 = vst [vmem:[%s1255_s7 + $0x30] sm:$0xff] %v558_v51  ;;  %v447_v28 = vpop.permute.xlu1 %446  ;;  %v445_v47 = vpop.permute.xlu0 %444 }
  0xb9   : > { %v501_v31 = vsub.f32 %v1035_v62, %v447_v28  ;;  %v500_v29 = vsub.f32 %v1044_v1, %v445_v47 }
  0xbb   : > { %v561_v62 = vsel %vm551_vm3, %v501_v31, %v539_v52  ;;  %v560_v1 = vsel %vm551_vm3, %v500_v29, %v538_v61 }
  0xbc   : > { %577 = vst [vmem:[%s1255_s7 + $0x48] sm:$0xff] %v561_v62  ;;  %576 = vst [vmem:[%s1255_s7 + $0x40] sm:$0xff] %v560_v1  ;;  %v451_v40 = vpop.permute.xlu1 %450  ;;  %v449_v58 = vpop.permute.xlu0 %448 }
  0xbd   : > { %v503_v43 = vsub.f32 %v1080_v34, %v451_v40  ;;  %v502_v60 = vsub.f32 %v1082_v35, %v449_v58 }
  0xbf   : > { %v563_v34 = vsel %vm551_vm3, %v503_v43, %v541_v30  ;;  %v562_v35 = vsel %vm551_vm3, %v502_v60, %v540_v27 }
  0xc0   : > { %579 = vst [vmem:[%s1255_s7 + $0x58] sm:$0xff] %v563_v34  ;;  %578 = vst [vmem:[%s1255_s7 + $0x50] sm:$0xff] %v562_v35  ;;  %v455_v55 = vpop.permute.xlu1 %454  ;;  %v453_v25 = vpop.permute.xlu0 %452 }
  0xc1   : > { %v505_v5 = vsub.f32 %v1107_v53, %v455_v55  ;;  %v504_v24 = vsub.f32 %v1426_v21, %v453_v25 }
  0xc3   : > { %v565_v53 = vsel %vm551_vm3, %v505_v5, %v543_v39  ;;  %v564_v13 = vsel %vm551_vm3, %v504_v24, %v542_v42 }
  0xc4   : > { %581 = vst [vmem:[%s1255_s7 + $0x68] sm:$0xff] %v565_v53  ;;  %580 = vst [vmem:[%s1255_s7 + $0x60] sm:$0xff] %v564_v13  ;;  %v459_v6 = vpop.permute.xlu1 %458  ;;  %v457_v10 = vpop.permute.xlu0 %456 }
  0xc5   : > { %v507_v20 = vsub.f32 %v1431_v23, %v459_v6  ;;  %v506_v7 = vsub.f32 %v1432_v22, %v457_v10 }
  0xc7   : > { %v567_v38 = vsel %vm551_vm3, %v507_v20, %v545_v54  ;;  %v566_v4 = vsel %vm551_vm3, %v506_v7, %v544_v14 }
  0xc8   : > { %583 = vst [vmem:[%s1255_s7 + $0x78] sm:$0xff] %v567_v38  ;;  %582 = vst [vmem:[%s1255_s7 + $0x70] sm:$0xff] %v566_v4 }
  0xc9 PF: > { %s14_s17 = sadd.s32 1, %s797_s17   ;;  %s1435_s15 = smov %s793_s16 }
  0xca   : > { %p11_p5 = scmp.ge.s32.totalorder %s14_s17, 4   ;;  %s1436_s16 = smov %s1438_s18 }
  0xcc   :  { %13 = sbr.rel (!%p11_p5) target bundleno = 2 (0x2), region = 72 }

</bundles_post_ra>
